<compile_context>
chip_gen: v7x
topology: tpu7x:2x2x1
jax: 0.10.0
libtpu: 0.0.40
codegen_flags: <defaults>
</compile_context>

<pallas_src>
import functools

import jax
import jax.numpy as jnp
from jax import lax
from jax.experimental import pallas as pl
from jax.experimental.pallas import tpu as pltpu

LANE = 128      # TPU lane width; padded feature dim for all layers.
HIDDEN = 64
TB_MAX = 2048   # max batch-tile rows (review: 1024-2048; ~3 MiB VMEM worst case).


def _round_up(n, m):
    return ((n + m - 1) // m) * m


def value_kernel(x_ref, w1_ref, w2_ref, misc_ref, out_ref, *, precision):
    # misc layout: row0 = w3 (lane-packed), row1 = b1, row2 = b2, row3[0] = b3.
    x = x_ref[...]                                            # (TB, S)
    # fc1 + relu: padded cols of w1/b1 are 0 -> stay exactly 0 through relu.
    h = jnp.dot(x, w1_ref[...], preferred_element_type=jnp.float32,
                precision=precision) + misc_ref[1:2, :]       # (TB, 128)
    h = jnp.maximum(h, 0.0)
    # fc2 + relu: zero rows/cols of w2 contribute nothing.
    h = jnp.dot(h, w2_ref[...], preferred_element_type=jnp.float32,
                precision=precision) + misc_ref[2:3, :]       # (TB, 128)
    h = jnp.maximum(h, 0.0)
    # fc3, lane-packed: v[0, r] = sum_a w3[a] * h[r, a]. Contract both lane
    # dims (q @ k^T pattern); rows 1..7 of misc give unused garbage rows.
    v = lax.dot_general(misc_ref[...], h, (((1,), (1,)), ((), ())),
                        preferred_element_type=jnp.float32,
                        precision=precision)                  # (8, TB)
    out_ref[...] = v[0:1, :] + misc_ref[3:4, 0:1]             # (1, TB), batch in lanes


def pack_params(w1_t, b1, w2_t, b2, w3_t, b3):
    """Pad weights to lane-dense shapes; pack w3 + all biases into one (8,128)
    tensor. w*_t are (in_features, out_features)."""
    S, H = w1_t.shape
    H2, A = w2_t.shape
    assert H == H2 and H <= LANE and A <= LANE
    w1_p = jnp.zeros((S, LANE), jnp.float32).at[:, :H].set(w1_t)
    w2_p = jnp.zeros((LANE, LANE), jnp.float32).at[:H, :A].set(w2_t)
    misc = (jnp.zeros((8, LANE), jnp.float32)
            .at[0, :A].set(w3_t[:, 0])   # fc3 weight, lane-packed
            .at[1, :H].set(b1)
            .at[2, :A].set(b2)
            .at[3, 0].set(b3[0]))
    return w1_p, w2_p, misc


def _choose_tile(batch):
    if batch < LANE:
        # Single exact tile: block dims == array dims (no padding, no overrun).
        return max(batch, 1)
    # Multiple of 128 (lane-packed output), <= TB_MAX, and capped at ~B/2 so
    # large batches keep >= 2 grid steps for v7x's two TensorCores.
    half = _round_up(-(-batch // 2), LANE)
    return min(TB_MAX, half)


def value_forward(x, packed_params, *, precision=None):
    """Pallas forward: x (B, S) -> value (B, 1)."""
    w1_p, w2_p, misc = packed_params
    B, S = x.shape

    TB = _choose_tile(B)
    grid = (pl.cdiv(B, TB),)
    n_out = grid[0] * TB        # output lanes (>= B); ragged tail sliced off below

    rows = n_out
    flops = 2 * rows * (S * LANE + LANE * LANE + 8 * LANE)
    bytes_accessed = 4 * (rows * S + S * LANE + LANE * LANE + 8 * LANE + rows)

    out = pl.pallas_call(
        functools.partial(value_kernel, precision=precision),
        out_shape=jax.ShapeDtypeStruct((1, n_out), jnp.float32),
        grid_spec=pltpu.PrefetchScalarGridSpec(
            num_scalar_prefetch=0,
            grid=grid,
            in_specs=[
                pl.BlockSpec((TB, S), lambda i: (i, 0)),       # x: tiled over batch
                pl.BlockSpec((S, LANE), lambda i: (0, 0)),     # w1: VMEM-resident
                pl.BlockSpec((LANE, LANE), lambda i: (0, 0)),  # w2
                pl.BlockSpec((8, LANE), lambda i: (0, 0)),     # w3 + biases, packed
            ],
            out_specs=pl.BlockSpec((1, TB), lambda i: (0, i)), # lane-packed values
        ),
        compiler_params=pltpu.CompilerParams(
            dimension_semantics=("parallel",)),
        cost_estimate=pl.CostEstimate(flops=flops, transcendentals=0,
                                      bytes_accessed=bytes_accessed),
    )(x, w1_p, w2_p, misc)

    # Contiguous prefix slice of the lane-packed output, then (B, 1).
    return out[:, :B].reshape(B, 1)


def init_params(key, state_space, action_space, hidden=HIDDEN):
    """Matches Value.init_weights: weights ~ N(0, 1), biases = 0.
    Weights stored transposed (in_features, out_features) for x @ W."""
    k1, k2, k3 = jax.random.split(key, 3)
    w1_t = jax.random.normal(k1, (state_space, hidden), jnp.float32)
    w2_t = jax.random.normal(k2, (hidden, action_space), jnp.float32)
    w3_t = jax.random.normal(k3, (action_space, 1), jnp.float32)
    b1 = jnp.zeros((hidden,), jnp.float32)
    b2 = jnp.zeros((action_space,), jnp.float32)
    b3 = jnp.zeros((1,), jnp.float32)
    return w1_t, b1, w2_t, b2, w3_t, b3


def value_ref(x, w1_t, b1, w2_t, b2, w3_t, b3):
    h = jnp.maximum(x @ w1_t + b1, 0.0)
    h = jnp.maximum(h @ w2_t + b2, 0.0)
    return h @ w3_t + b3


if __name__ == "__main__":
    # Small shapes consistent with the module: batch=2, state dim 8, 2 actions.
    batch, state_space, action_space = 2, 8, 2

    key = jax.random.PRNGKey(0)
    pkey, xkey, bkey, x2key = jax.random.split(key, 4)

    # Module-faithful init (weights ~ N(0,1), biases = 0).
    w1_t, b1, w2_t, b2, w3_t, b3 = init_params(pkey, state_space, action_space)
    packed = pack_params(w1_t, b1, w2_t, b2, w3_t, b3)

    x = jax.random.normal(xkey, (batch, state_space), jnp.float32)
    val = value_forward(x, packed)
    jax.block_until_ready(val)

    ref = value_ref(x, w1_t, b1, w2_t, b2, w3_t, b3)
    assert val.shape == (batch, 1)
    assert jnp.allclose(val, ref, atol=1e-3, rtol=1e-3)

    # Second check: non-zero biases + a batch exercising the multi-step grid
    # and the ragged edge block (B=300 -> TB=256, grid=(2,), 512 output lanes).
    bk1, bk2, bk3 = jax.random.split(bkey, 3)
    b1n = 0.1 * jax.random.normal(bk1, (HIDDEN,), jnp.float32)
    b2n = 0.1 * jax.random.normal(bk2, (action_space,), jnp.float32)
    b3n = 0.1 * jax.random.normal(bk3, (1,), jnp.float32)
    packed_n = pack_params(w1_t, b1n, w2_t, b2n, w3_t, b3n)

    x_big = jax.random.normal(x2key, (300, state_space), jnp.float32)
    val_big = value_forward(x_big, packed_n)
    jax.block_until_ready(val_big)

    ref_big = value_ref(x_big, w1_t, b1n, w2_t, b2n, w3_t, b3n)
    assert val_big.shape == (300, 1)
    assert jnp.allclose(val_big, ref_big, atol=1e-3, rtol=1e-3)

    print("KERNEL_OK")
</pallas_src>

<mosaic_0001>
module attributes {stable_mosaic.version = 11 : i64} {
  func.func @value_kernel(%arg0: i32, %arg1: memref<2x8xf32, #tpu.memory_space<vmem>>, %arg2: memref<8x128xf32, #tpu.memory_space<vmem>>, %arg3: memref<128x128xf32, #tpu.memory_space<vmem>>, %arg4: memref<8x128xf32, #tpu.memory_space<vmem>>, %arg5: memref<1x2xf32, #tpu.memory_space<vmem>>) attributes {dimension_semantics = [#tpu.dimension_semantics<parallel>], iteration_bounds = array<i64: 1>, scalar_prefetch = 0 : i64, scratch_operands = 0 : i64, tpu.core_type = #tpu.core_type<tc>, window_params = [{transform_indices = @transform_0, window_bounds = array<i64: 2, 8>}, {pipeline_mode = #tpu.pipeline_mode<synchronous>, transform_indices = @transform_1, window_bounds = array<i64: 8, 128>}, {pipeline_mode = #tpu.pipeline_mode<synchronous>, transform_indices = @transform_2, window_bounds = array<i64: 128, 128>}, {pipeline_mode = #tpu.pipeline_mode<synchronous>, transform_indices = @transform_3, window_bounds = array<i64: 8, 128>}, {transform_indices = @transform_4, window_bounds = array<i64: 1, 2>}]} {
    %c0 = arith.constant 0 : index
    %c0_0 = arith.constant 0 : index
    %0 = vector.load %arg1[%c0, %c0_0] : memref<2x8xf32, #tpu.memory_space<vmem>>, vector<2x8xf32>
    %c0_1 = arith.constant 0 : index
    %c0_2 = arith.constant 0 : index
    %1 = vector.load %arg2[%c0_1, %c0_2] : memref<8x128xf32, #tpu.memory_space<vmem>>, vector<8x128xf32>
    %cst = arith.constant dense<0.000000e+00> : vector<2x128xf32>
    %2 = tpu.matmul %0, %1, %cst {dimension_numbers = #tpu.dot_dimension_numbers<[1], [0], [0], [1], [0, 0, 1, 1], [], []>} : vector<2x8xf32>, vector<8x128xf32>, vector<2x128xf32> -> vector<2x128xf32>
    %c1 = arith.constant 1 : index
    %c0_3 = arith.constant 0 : index
    %3 = vector.load %arg4[%c1, %c0_3] : memref<8x128xf32, #tpu.memory_space<vmem>>, vector<1x128xf32>
    %4 = vector.broadcast %3 : vector<1x128xf32> to vector<2x128xf32>
    %5 = arith.addf %2, %4 : vector<2x128xf32>
    %cst_4 = arith.constant 0.000000e+00 : f32
    %6 = vector.broadcast %cst_4 : f32 to vector<2x128xf32>
    %7 = arith.maximumf %5, %6 : vector<2x128xf32>
    %c0_5 = arith.constant 0 : index
    %c0_6 = arith.constant 0 : index
    %8 = vector.load %arg3[%c0_5, %c0_6] : memref<128x128xf32, #tpu.memory_space<vmem>>, vector<128x128xf32>
    %cst_7 = arith.constant dense<0.000000e+00> : vector<2x128xf32>
    %9 = tpu.matmul %7, %8, %cst_7 {dimension_numbers = #tpu.dot_dimension_numbers<[1], [0], [0], [1], [0, 0, 1, 1], [], []>} : vector<2x128xf32>, vector<128x128xf32>, vector<2x128xf32> -> vector<2x128xf32>
    %c2 = arith.constant 2 : index
    %c0_8 = arith.constant 0 : index
    %10 = vector.load %arg4[%c2, %c0_8] : memref<8x128xf32, #tpu.memory_space<vmem>>, vector<1x128xf32>
    %11 = vector.broadcast %10 : vector<1x128xf32> to vector<2x128xf32>
    %12 = arith.addf %9, %11 : vector<2x128xf32>
    %cst_9 = arith.constant 0.000000e+00 : f32
    %13 = vector.broadcast %cst_9 : f32 to vector<2x128xf32>
    %14 = arith.maximumf %12, %13 : vector<2x128xf32>
    %c0_10 = arith.constant 0 : index
    %c0_11 = arith.constant 0 : index
    %15 = vector.load %arg4[%c0_10, %c0_11] : memref<8x128xf32, #tpu.memory_space<vmem>>, vector<8x128xf32>
    %cst_12 = arith.constant dense<0.000000e+00> : vector<8x2xf32>
    %16 = tpu.matmul %15, %14, %cst_12 {dimension_numbers = #tpu.dot_dimension_numbers<[1], [1], [0], [0], [0, 0, 1, 0], [], []>} : vector<8x128xf32>, vector<2x128xf32>, vector<8x2xf32> -> vector<8x2xf32>
    %17 = vector.extract_strided_slice %16 {offsets = [0, 0], sizes = [1, 2], strides = [1, 1]} : vector<8x2xf32> to vector<1x2xf32>
    %c3 = arith.constant 3 : index
    %c0_13 = arith.constant 0 : index
    %18 = vector.load %arg4[%c3, %c0_13] : memref<8x128xf32, #tpu.memory_space<vmem>>, vector<1x1xf32>
    %19 = vector.broadcast %18 : vector<1x1xf32> to vector<1x2xf32>
    %20 = arith.addf %17, %19 : vector<1x2xf32>
    %c0_14 = arith.constant 0 : index
    %c0_15 = arith.constant 0 : index
    %21 = vector.load %arg5[%c0_14, %c0_15] : memref<1x2xf32, #tpu.memory_space<vmem>>, vector<1x2xf32>
    tpu.vector_store %arg5[%c0_14, %c0_15], %20 {strides = array<i32>} : memref<1x2xf32, #tpu.memory_space<vmem>>, vector<1x2xf32>,
    return
  }
  func.func @transform_0(%arg0: i32) -> (i32, i32) {
    %c0_i32 = arith.constant 0 : i32
    %c0_i32_0 = arith.constant 0 : i32
    return %arg0, %c0_i32 : i32, i32
  }
  func.func @transform_1(%arg0: i32) -> (i32, i32) {
    %c0_i32 = arith.constant 0 : i32
    %c0_i32_0 = arith.constant 0 : i32
    %c0_i32_1 = arith.constant 0 : i32
    return %c0_i32, %c0_i32_0 : i32, i32
  }
  func.func @transform_2(%arg0: i32) -> (i32, i32) {
    %c0_i32 = arith.constant 0 : i32
    %c0_i32_0 = arith.constant 0 : i32
    %c0_i32_1 = arith.constant 0 : i32
    return %c0_i32, %c0_i32_0 : i32, i32
  }
  func.func @transform_3(%arg0: i32) -> (i32, i32) {
    %c0_i32 = arith.constant 0 : i32
    %c0_i32_0 = arith.constant 0 : i32
    %c0_i32_1 = arith.constant 0 : i32
    return %c0_i32, %c0_i32_0 : i32, i32
  }
  func.func @transform_4(%arg0: i32) -> (i32, i32) {
    %c0_i32 = arith.constant 0 : i32
    %c0_i32_0 = arith.constant 0 : i32
    return %c0_i32, %arg0 : i32, i32
  }
}

</mosaic_0001>

<bundles_post_ra>
// kernel: tpu_custom_call.1
= control target key start
LH: loop header
LB: loop body
LE: loop exit
PB: predicated region body
PF: predicated region fallthrough
CT: control target
= control target key end

     0   :  { %9 = vsyncpa [#allocation3], 0  ;;  %s621_s0 = inlined_call_operand.hbm [shape: f32[2,8], index: 0, kind: input, shape index: {}]   ;;  %s622_s1 = inlined_call_operand.hbm [shape: f32[8,128], index: 1, kind: input, shape index: {}]   ;;  %s623_s2 = inlined_call_operand.hbm [shape: f32[128,128], index: 2, kind: input, shape index: {}]   ;;  %s624_s3 = inlined_call_operand.vmem [shape: f32[8,128], index: 3, kind: input, shape index: {}]   ;;  %s625_s4 = inlined_call_operand.hbm [shape: f32[1,2], index: 4, kind: output, shape index: {}]  }
   0x1   :  { %10 = vsyncpa [#allocation6], 0 }
   0x2   :  { %11 = vsyncpa [#allocation4], 0  ;;  %s523_s15 = smov [#allocation5]   ;;  %s524_s17 = smov [#allocation2]  }
   0x3   :  { %s28_s16 = sshll.u32 %s523_s15, 4  ;;  %s18_s18 = sshll.u32 %s524_s17, 4  ;;  %s29_s16 = int_to_ptr.vmem [resolvable:$true] %s28_s16  ;;  %s19_s18 = int_to_ptr.vmem [resolvable:$true] %s18_s18 }
   0x4   :  { %s429_s21 = scalar_lea.hbm %s622_s1, 128 }
   0x5   :  { %p430_p0 = scmp.ne.s32.totalorder %s622_s1, %s429_s21  ;;  %p433_p1 = scmp.lt.u32.totalorder %s429_s21, %s622_s1 }
   0x7   :  { %p435_p2 = pnand %p433_p1, %p430_p0 }
   0x9   :  { %438 = shalt.err (!%p435_p2)
}
   0xa   :  { %s439_s26 = scalar_lea.vmem %s29_s16, 128  ;;  %p444_p4 = scmp.lt.s32.totalorder %s29_s16, %s29_s16 }
   0xb   :  { %p440_p3 = scmp.ne.s32.totalorder %s29_s16, %s439_s26  ;;  %p445_p5 = scmp.lt.s32.totalorder %s439_s26, %s439_s26 }
   0xd   :  { %p446_p6 = por %p445_p5, %p444_p4 }
   0xf   :  { %p447_p7 = pnand %p446_p6, %p440_p3 }
  0x11   :  { %450 = shalt.err (!%p447_p7)
}
  0x12   :  { %31 = dma.hbm_to_vmem [thread:$0]  %s622_s1, 128, %s29_s16, [#allocation6]  }
  0x13   :  { %s451_s5 = scalar_lea.hbm %s621_s0, 32 }
  0x14   :  { %p452_p8 = scmp.ne.s32.totalorder %s621_s0, %s451_s5  ;;  %p455_p9 = scmp.lt.u32.totalorder %s451_s5, %s621_s0 }
  0x16   :  { %p457_p10 = pnand %p455_p9, %p452_p8 }
  0x18   :  { %460 = shalt.err (!%p457_p10)
}
  0x19   :  { %s461_s10 = scalar_lea.vmem %s19_s18, 32  ;;  %p466_p12 = scmp.lt.s32.totalorder %s19_s18, %s19_s18 }
  0x1a   :  { %p462_p11 = scmp.ne.s32.totalorder %s19_s18, %s461_s10  ;;  %p467_p13 = scmp.lt.s32.totalorder %s461_s10, %s461_s10 }
  0x1c   :  { %p468_p0 = por %p467_p13, %p466_p12 }
  0x1e   :  { %p469_p1 = pnand %p468_p0, %p462_p11 }
  0x20   :  { %472 = shalt.err (!%p469_p1)
}
  0x21   :  { %21 = dma.hbm_to_vmem [thread:$0]  %s621_s0, 32, %s19_s18, [#allocation3]  }
  0x22   :  { %s525_s12 = smov [#allocation7]   ;;  %s473_s16 = scalar_lea.hbm %s623_s2, 2048 }
  0x23   :  { %s37_s13 = sshll.u32 %s525_s12, 4  ;;  %p474_p2 = scmp.ne.s32.totalorder %s623_s2, %s473_s16  ;;  %s38_s13 = int_to_ptr.vmem [resolvable:$true] %s37_s13 }
  0x24   :  { %p477_p3 = scmp.lt.u32.totalorder %s473_s16, %s623_s2 }
  0x26   :  { %p479_p4 = pnand %p477_p3, %p474_p2 }
  0x28   :  { %482 = shalt.err (!%p479_p4)
}
  0x29   :  { %s483_s22 = scalar_lea.vmem %s38_s13, 2048  ;;  %p488_p6 = scmp.lt.s32.totalorder %s38_s13, %s38_s13 }
  0x2a   :  { %p484_p5 = scmp.ne.s32.totalorder %s38_s13, %s483_s22  ;;  %p489_p7 = scmp.lt.s32.totalorder %s483_s22, %s483_s22 }
  0x2c   :  { %p490_p8 = por %p489_p7, %p488_p6 }
  0x2e   :  { %p491_p9 = pnand %p490_p8, %p484_p5 }
  0x30   :  { %494 = shalt.err (!%p491_p9)
}
  0x31   :  { %s526_s0 = smov 128   ;;  %s527_s18 = smov 8  }
  0x32   :  { %43 = dma.hbm_to_vmem [thread:$0]  %s623_s2, 2048, %s38_s13, [#allocation6], %s526_s0, %s526_s0, %s527_s18  }
  0x33   :  { %517 = dma.done.wait [#allocation3], 32  }
  0x34   :  { %518 = vsyncadd [#allocation3], 4294967264 }
  0x35   :  { %519 = dma.done.wait [#allocation6], 2176  }
  0x36   :  { %520 = vsyncadd [#allocation6], 4294965120  ;;  %v528_v0 = vmov 0.0   ;;  %vm529_vm0 = vmmov 0   ;;  %v530_v1 = vmov 0.0|0.0   ;;  %vm62_vm1 = vcmask 64512  }
  0x37   :  { %349 = vmatprep.subr.mxu0 %v528_v0  ;;  %351 = vmatprep.mubr.msk.f32.mxu0 %vm529_vm0, %v528_v0  ;;  %v56_v2 = vld [vmem:[#allocation5] sm:$0xff]  ;;  %v55_v3 = vld [vmem:[#allocation2] sm:$0x3]  ;;  %v137_v4 = vld [vmem:[#allocation7] sm:$0xff]  ;;  %v531_v34 = vmov 0   ;;  %s532_s6 = smov [#allocation8]  }
  0x38   :  { %394 = vmatprep.subr.bf16.mxu1 %v530_v1  ;;  %386 = vmatprep.mubr.msk.f32.mxu1 %vm529_vm0, %v528_v0  ;;  %v138_v5 = vld [vmem:[#allocation7 + $0x8] sm:$0xff]  ;;  %v139_v6 = vld [vmem:[#allocation7 + $0x10] sm:$0xff]  ;;  %v140_v7 = vld [vmem:[#allocation7 + $0x18] sm:$0xff]  ;;  %s315_s7 = sshll.u32 %s532_s6, 4  ;;  %vm307_vm2 = vcmask 8192   ;;  %s316_s7 = int_to_ptr.vmem [resolvable:$true] %s315_s7 }
  0x39   :  { %350 = vmatpush3.msra.mxu0 %v56_v2  ;;  %v395_v8 = vpack.c.bf16 %v138_v5, %v137_v4  ;;  %v398_v9 = vpack.c.bf16 %v140_v7, %v139_v6  ;;  %v141_v10 = vld [vmem:[#allocation7 + $0x20] sm:$0xff]  ;;  %v142_v11 = vld [vmem:[#allocation7 + $0x28] sm:$0xff]  ;;  %v143_v13 = vld [vmem:[#allocation7 + $0x30] sm:$0xff]  ;;  %428 = vset.pattern.permute.xlu0 %v531_v34  ;;  %s495_s8 = scalar_lea.vmem %s316_s7, 16  ;;  %s499_s9 = scalar_lea.vmem %s316_s7, 32 }
  0x3a   :  { %352 = vmatmul.mubr.msk.f32.vlgmr.msra.gmra.mrb[0].mxu0 %vm62_vm1, %v55_v3  ;;  %389 = vmatprep.subr.mxu0 %v528_v0  ;;  %v401_v12 = vpack.c.bf16 %v142_v11, %v141_v10  ;;  %v144_v14 = vld [vmem:[#allocation7 + $0x38] sm:$0xff]  ;;  %v145_v16 = vld [vmem:[#allocation7 + $0x40] sm:$0xff]  ;;  %v146_v17 = vld [vmem:[#allocation7 + $0x48] sm:$0xff]  ;;  %p496_p10 = scmp.ne.s32.totalorder %s316_s7, %s495_s8  ;;  %p500_p11 = scmp.lt.s32.totalorder %s316_s7, %s316_s7 }
  0x3b   :  { %391 = vmatprep.mubr.msk.f32.mxu0 %vm529_vm0, %v528_v0  ;;  %396 = vmatpush3.bf16.msra.mxu1 %v395_v8  ;;  %v404_v15 = vpack.c.bf16 %v144_v14, %v143_v13  ;;  %v407_v18 = vpack.c.bf16 %v146_v17, %v145_v16  ;;  %v147_v19 = vld [vmem:[#allocation7 + $0x50] sm:$0xff]  ;;  %v148_v20 = vld [vmem:[#allocation7 + $0x58] sm:$0xff]  ;;  %v149_v22 = vld [vmem:[#allocation7 + $0x60] sm:$0xff]  ;;  %p501_p12 = scmp.lt.s32.totalorder %s499_s9, %s495_s8 }
  0x3c   :  { %397 = vmatprep.subr.bf16.mxu1 %v530_v1  ;;  %v410_v21 = vpack.c.bf16 %v148_v20, %v147_v19  ;;  %v150_v23 = vld [vmem:[#allocation7 + $0x68] sm:$0xff]  ;;  %v151_v25 = vld [vmem:[#allocation7 + $0x70] sm:$0xff]  ;;  %v152_v26 = vld [vmem:[#allocation7 + $0x78] sm:$0xff] }
  0x3d   :  { %v413_v24 = vpack.c.bf16 %v150_v23, %v149_v22  ;;  %v416_v27 = vpack.c.bf16 %v152_v26, %v151_v25  ;;  %v325_v28 = vld [vmem:[%s624_s3 + $0x1] ss:$0 sm:$0xff]  ;;  %v300_v33 = vld [vmem:[%s624_s3 + $0x3] sm:$0x1]  ;;  %v327_v35 = vld [vmem:[%s624_s3 + $0x2] ss:$0 sm:$0xff]  ;;  %p502_p13 = por %p501_p12, %p500_p11 }
  0x3e   :  { %303 = vperm.xlu0 %428, %v300_v33   ;;  %v229_v40 = vld [vmem:[%s624_s3] sm:$0xff] }
  0x3f   :  { %399 = vmatpush3.bf16.msra.mxu1 %v398_v9  ;;  %p503_p0 = pnand %p502_p13, %p496_p10 }
  0x40   :  { %400 = vmatprep.subr.bf16.mxu1 %v530_v1 }
  0x43   :  { %402 = vmatpush3.bf16.msra.mxu1 %v401_v12 }
  0x44   :  { %403 = vmatprep.subr.bf16.mxu1 %v530_v1 }
  0x47   :  { %405 = vmatpush3.bf16.msra.mxu1 %v404_v15 }
  0x48   :  { %406 = vmatprep.subr.bf16.mxu1 %v530_v1 }
  0x4b   :  { %408 = vmatpush3.bf16.msra.mxu1 %v407_v18 }
  0x4c   :  { %409 = vmatprep.subr.bf16.mxu1 %v530_v1 }
  0x4f   :  { %411 = vmatpush3.bf16.msra.mxu1 %v410_v21 }
  0x50   :  { %412 = vmatprep.subr.bf16.mxu1 %v530_v1 }
  0x53   :  { %414 = vmatpush3.bf16.msra.mxu1 %v413_v24 }
  0x54   :  { %415 = vmatprep.subr.bf16.mxu1 %v530_v1 }
  0x57   :  { %417 = vmatpush3.bf16.msra.mxu1 %v416_v27 }
  0xbd   :  { %v304_v41 = vpop.permute.xlu0 %303 }
 0x10d   :  { %v132_v29 = vpop.f32.mrb[0].mxu0 }
 0x10e   :  { %v133_v30 = vadd.f32 %v325_v28, %v132_v29  ;;  %v353_v31 = vpop.f32.mrb[1].mxu0 }
 0x110   :  { %v136_v32 = vmax.f32 %v133_v30, 0.0 }
 0x112   :  { %387 = vmatmul.mubr.f32.vlgmr.msra.gmra.mrb[0].mxu1 %v136_v32 }
 0x1e5   :  { %v224_v36 = vpop.f32.mrb[0].mxu1 }
 0x1e6   :  { %v225_v37 = vadd.f32 %v327_v35, %v224_v36  ;;  %v388_v38 = vpop.f32.mrb[1].mxu1 }
 0x1e8   :  { %v228_v39 = vmax.f32 %v225_v37, 0.0 }
 0x1ea   :  { %390 = vmatpush3.xpose.msra.mxu0 %v228_v39 }
 0x1ed   :  { %392 = vmatmul.mubr.f32.vlgmr.msra.gmra.mrb[2].mxu0 %v229_v40 }
 0x2c0   :  { %v296_v42 = vpop.f32.mrb[2].mxu0 }
 0x2c1   :  { %v306_v43 = vadd.f32 %v304_v41, %v296_v42  ;;  %v393_v44 = vpop.f32.mrb[3].mxu0 }
 0x2c3   :  { %308 = vst.msk [vmem:[#allocation8] sm:$0x1] %vm307_vm2, %v306_v43 }
 0x2c4   :  { %506 = shalt.err (!%p503_p0)
}
 0x2c5   :  { %s507_s1 = scalar_lea.hbm %s625_s4, 16 }
 0x2c6   :  { %p508_p1 = scmp.ne.s32.totalorder %s625_s4, %s507_s1  ;;  %p511_p2 = scmp.lt.u32.totalorder %s507_s1, %s625_s4 }
 0x2c8   :  { %p513_p3 = pnand %p511_p2, %p508_p1 }
 0x2ca   :  { %516 = shalt.err (!%p513_p3)
}
 0x2cb   :  { %318 = dma.vmem_to_hbm [thread:$0]  %s316_s7, 16, %s625_s4, [#allocation4]  }
 0x2cc   :  { %521 = dma.done.wait [#allocation4], 16  }
 0x2cd   :  { %522 = vsyncadd [#allocation4], 4294967280 }
 0x2ce   :  { %322 = vsyncpa [#allocation3], 1 }
 0x2cf   :  { %323 = vsyncpa [#allocation6], 1 }
 0x2d0   :  { %324 = vsyncpa [#allocation4], 1 }

</bundles_post_ra>
